<compile_context>
chip_gen: v7x
topology: tpu7x:2x2x1
jax: 0.10.0
libtpu: 0.0.40
codegen_flags: <defaults>
</compile_context>

<pallas_src>
import functools

import numpy as np
import jax
import jax.numpy as jnp
from jax import lax
from jax.experimental import pallas as pl
from jax.experimental.pallas import tpu as pltpu

HM = 64                    # the model hardcodes hm_sz = 64
M = HM * HM                # flattened per-frame spatial size (lane axis)
IN_CH = 17                 # frame channels (fixed by the model)
C_PAD = 24                 # 17 padded up to a multiple of 8 for clean sublane tiling
ENC_DIM = 8                # encode_dim (must equal hidden_dim for the original model)
HID = 8                    # hidden_dim
BN_EPS = 1e-5
_F32 = jnp.float32
_BF16 = jnp.bfloat16

_TAPS = tuple((dy, dx) for dy in range(3) for dx in range(3))
_VMEM_LIMIT = 36 * 1024 * 1024          # ~56% of v7x's 64 MiB physical VMEM

# pltpu.roll direction is resolved once on-device before any tracing; forward() refuses
# to trace if calibration has not run (avoids silently mis-shifted 3x3 taps).
_ROLL_SIGN = None


def _calibrate_roll_sign():
    global _ROLL_SIGN

    def k(x_ref, o_ref):
        o_ref[...] = pltpu.roll(x_ref[...], 1, 1)

    x = lax.broadcasted_iota(jnp.float32, (8, 128), 1)
    y = pl.pallas_call(k, out_shape=jax.ShapeDtypeStruct((8, 128), jnp.float32))(x)
    if bool(jnp.all(y == jnp.roll(x, 1, axis=1))):
        _ROLL_SIGN = 1
    elif bool(jnp.all(y == jnp.roll(x, -1, axis=1))):
        _ROLL_SIGN = -1
    else:
        raise RuntimeError("Unexpected pltpu.roll semantics")


# ----------------------------------------------------------------------------------
# In-kernel building blocks (operate on VMEM values / refs)
# ----------------------------------------------------------------------------------
def _tap_masks(nm):
    """Per-tap validity masks, (1, nm) bool.  nm = n_frames * M; frames are M-contiguous
    lane segments, so positions whose 3x3 source falls outside their own 64x64 frame are
    masked -- which also zeroes any cross-frame leakage of the lane rolls."""
    pos = lax.broadcasted_iota(jnp.int32, (1, nm), 1)
    row = jnp.bitwise_and(jnp.right_shift(pos, 6), HM - 1)   # (pos % 4096) // 64
    col = jnp.bitwise_and(pos, HM - 1)                       # pos % 64
    masks = []
    for dy, dx in _TAPS:
        cond = None
        if dy == 0:
            cond = row >= 1
        elif dy == 2:
            cond = row < HM - 1
        if dx == 0:
            c = col >= 1
            cond = c if cond is None else jnp.logical_and(cond, c)
        elif dx == 2:
            c = col < HM - 1
            cond = c if cond is None else jnp.logical_and(cond, c)
        masks.append(cond)                                   # None for the centre tap
    return masks


def _im2col(x, masks):
    """x (Cin, nm) f32 -> (9*Cin, nm) bf16 patch matrix, built entirely in VMEM.

    Taps are produced in pairs: roll/mask in f32, concat the pair (8-aligned for f32),
    cast the pair to bf16, then concat the bf16 chunks at 16-sublane-aligned offsets.
    This keeps every concat tile-aligned and the transient f32 footprint to ~2 pieces."""
    if _ROLL_SIGN is None:
        raise RuntimeError("_calibrate_roll_sign() must run before tracing the kernels")
    nm = x.shape[1]

    def tap(k):
        dy, dx = _TAPS[k]
        off = (dy - 1) * HM + (dx - 1)                       # flat source offset of tap
        xs = x if off == 0 else pltpu.roll(x, shift=(-_ROLL_SIGN * off) % nm, axis=1)
        if masks[k] is not None:
            xs = jnp.where(masks[k], xs, 0.0)
        return xs

    chunks = []
    for k in range(0, 9, 2):
        if k + 1 < 9:
            c = jnp.concatenate([tap(k), tap(k + 1)], axis=0)
        else:
            c = tap(k)
        chunks.append(c.astype(_BF16))
    return jnp.concatenate(chunks, axis=0)


def _conv_block(x, w_ref, b_ref, g_ref, be_ref, masks):
    """Fused Conv2d(3x3, pad=1) + bias + BatchNorm2d(train-mode batch stats) + ReLU.

    x (Cin, nm) f32 holds every frame of the BN batch along the lane axis, so the
    per-channel mean/var over axis=1 ARE the BatchNorm batch statistics."""
    patches = _im2col(x, masks)                                       # (9*Cin, nm) bf16
    y = jnp.dot(w_ref[...], patches, preferred_element_type=_F32) + b_ref[...]
    mean = jnp.mean(y, axis=1, keepdims=True)
    var = jnp.mean(jnp.square(y - mean), axis=1, keepdims=True)       # two-pass variance
    scale = g_ref[...] * lax.rsqrt(var + BN_EPS)
    shift = be_ref[...] - mean * scale
    return jnp.maximum(y * scale + shift, 0.0)
    # TODO(synk): training-mode BatchNorm also updates running stats; that has no effect
    # on the forward output so it is not reproduced here.


def _gru_cell(px, h, gp, masks):
    """ConvGRUCell over all batch frames at once (lane-concatenated layout).

    px : (9*Cin, nm) bf16 im2col of the cell input (shared by gate & candidate convs)
    h  : (HID, nm) f32 previous hidden state
    gp : (wx, wgh, wch, bg, bc) with wx = [gate_x ; cand_x] fused into one (3H, 9*Cin)."""
    wx, wgh, wch, bg, bc = gp
    xs = jnp.dot(wx[...], px, preferred_element_type=_F32)            # (3*HID, nm)
    g = (xs[:2 * HID]
         + jnp.dot(wgh[...], _im2col(h, masks), preferred_element_type=_F32)
         + bg[...])
    reset = jax.nn.sigmoid(g[:HID])
    update = jax.nn.sigmoid(g[HID:])
    cand = jnp.tanh(xs[2 * HID:]
                    + jnp.dot(wch[...], _im2col(reset * h, masks),
                              preferred_element_type=_F32)
                    + bc[...])
    return (1.0 - update) * h + update * cand


# ----------------------------------------------------------------------------------
# Pallas kernels
# ----------------------------------------------------------------------------------
def _encode_seq_kernel(x_ref, w_ref, b_ref, g_ref, be_ref, o_ref):
    """Encoder ConvBlock over every observed frame (BN stats over all of them)."""
    masks = _tap_masks(x_ref.shape[1])
    o_ref[...] = _conv_block(x_ref[...], w_ref, b_ref, g_ref, be_ref, masks)
    # TODO(synk): very long observed sequences would need a frame-tiled two-phase-BN
    # variant; the whole observed sequence is currently resident in VMEM.


def _input_phase_kernel(*refs):
    """One observed time step: h1 = GRU1(enc_t, h1); h2 = GRU2(h1, h2)."""
    enc_ref = refs[0]
    gru1, gru2 = refs[1:6], refs[6:11]
    h1_ref, h2_ref = refs[11], refs[12]
    t = pl.program_id(0)

    @pl.when(t == 0)
    def _():
        h1_ref[...] = jnp.zeros(h1_ref.shape, h1_ref.dtype)
        h2_ref[...] = jnp.zeros(h2_ref.shape, h2_ref.dtype)

    masks = _tap_masks(h1_ref.shape[1])
    h1 = _gru_cell(_im2col(enc_ref[...], masks), h1_ref[...], gru1, masks)
    h1_ref[...] = h1
    h2_ref[...] = _gru_cell(_im2col(h1, masks), h2_ref[...], gru2, masks)


def _future_kernel(*refs):
    """Per grid step: decode h2 into this step's prediction; except on the last step,
    feed it back through encoder -> GRU1 -> GRU2 (hidden state resident in VMEM)."""
    h1_in, h2_in = refs[0], refs[1]
    enc_w, enc_b, enc_g, enc_be = refs[2:6]
    dec_w, dec_b, dec_g, dec_be = refs[6:10]
    gru1, gru2 = refs[10:15], refs[15:20]
    o_ref = refs[20]
    h1_s, h2_s = refs[21], refs[22]

    t = pl.program_id(0)

    @pl.when(t == 0)
    def _():
        h1_s[...] = h1_in[...]
        h2_s[...] = h2_in[...]

    masks = _tap_masks(h1_s.shape[1])

    # Decoder ConvBlock: h2 -> prediction for this step (BN over the B frames).
    pred = _conv_block(h2_s[...], dec_w, dec_b, dec_g, dec_be, masks)   # (C_PAD, nm)
    o_ref[0] = pred[:IN_CH]                     # only the 17 real channels hit HBM

    @pl.when(t < pl.num_programs(0) - 1)
    def _():
        xe = _conv_block(pred, enc_w, enc_b, enc_g, enc_be, masks)      # (ENC_DIM, nm)
        h1 = _gru_cell(_im2col(xe, masks), h1_s[...], gru1, masks)
        h1_s[...] = h1
        h2_s[...] = _gru_cell(_im2col(h1, masks), h2_s[...], gru2, masks)


# ----------------------------------------------------------------------------------
# pallas_call wrappers
# ----------------------------------------------------------------------------------
def _full_spec(shape):
    zeros = (0,) * len(shape)
    return pl.BlockSpec(shape, lambda t: zeros)


def _run_encoder_seq(x_cm, enc_p):
    return pl.pallas_call(
        _encode_seq_kernel,
        out_shape=jax.ShapeDtypeStruct((ENC_DIM, x_cm.shape[1]), _F32),
        compiler_params=pltpu.CompilerParams(vmem_limit_bytes=_VMEM_LIMIT),
    )(x_cm, *enc_p)


def _run_input_phase(enc, gru1_p, gru2_p, n_steps, lanes):
    # TODO(synk): on v7x the batch could additionally be split across the two
    # TensorCores (core_map / parallel batch axis); single-core here.
    operands = (enc,) + gru1_p + gru2_p
    in_specs = [pl.BlockSpec((ENC_DIM, lanes), lambda t: (0, t))]
    in_specs += [_full_spec(p.shape) for p in operands[1:]]
    state = jax.ShapeDtypeStruct((HID, lanes), _F32)
    return pl.pallas_call(
        _input_phase_kernel,
        out_shape=(state, state),
        grid=(n_steps,),
        in_specs=in_specs,
        out_specs=(pl.BlockSpec((HID, lanes), lambda t: (0, 0)),
                   pl.BlockSpec((HID, lanes), lambda t: (0, 0))),
        compiler_params=pltpu.CompilerParams(
            dimension_semantics=("arbitrary",), vmem_limit_bytes=_VMEM_LIMIT),
    )(*operands)


def _run_future_phase(h1, h2, enc_p, dec_p, gru1_p, gru2_p, future_pred, lanes):
    T = future_pred + 1
    operands = (h1, h2) + enc_p + dec_p + gru1_p + gru2_p
    in_specs = [_full_spec(p.shape) for p in operands]
    return pl.pallas_call(
        _future_kernel,
        out_shape=jax.ShapeDtypeStruct((T, IN_CH, lanes), _F32),
        grid=(T,),
        in_specs=in_specs,
        out_specs=pl.BlockSpec((1, IN_CH, lanes), lambda t: (t, 0, 0)),
        scratch_shapes=[pltpu.VMEM((HID, lanes), _F32),
                        pltpu.VMEM((HID, lanes), _F32)],
        compiler_params=pltpu.CompilerParams(
            dimension_semantics=("arbitrary",), vmem_limit_bytes=_VMEM_LIMIT),
    )(*operands)


# ----------------------------------------------------------------------------------
# Parameter packing (Torch layout -> matmul layout matching the in-kernel im2col)
# ----------------------------------------------------------------------------------
def _w_mat(w):
    """Torch conv weight (Cout, Cin, 3, 3) -> bf16 (Cout, 9*Cin), column order (tap, cin)."""
    cout, cin = w.shape[0], w.shape[1]
    return jnp.transpose(w, (0, 2, 3, 1)).reshape(cout, 9 * cin).astype(_BF16)


def _col(v, n=None):
    v = v.astype(_F32)
    if n is not None and v.shape[0] < n:
        v = jnp.pad(v, (0, n - v.shape[0]))
    return v.reshape(-1, 1)


def _pack_encoder(p):
    w = jnp.pad(p["enc_w"], ((0, 0), (0, C_PAD - IN_CH), (0, 0), (0, 0)))
    return (_w_mat(w), _col(p["enc_b"]), _col(p["enc_gamma"]), _col(p["enc_beta"]))


def _pack_decoder(p):
    w = jnp.pad(p["dec_w"], ((0, C_PAD - IN_CH), (0, 0), (0, 0), (0, 0)))
    return (_w_mat(w), _col(p["dec_b"], C_PAD),
            _col(p["dec_gamma"], C_PAD), _col(p["dec_beta"], C_PAD))


def _pack_gru(p, in_dim):
    wg, wc = p["w_gates"], p["w_can"]
    wx = jnp.concatenate([_w_mat(wg[:, :in_dim]), _w_mat(wc[:, :in_dim])], axis=0)
    return (wx, _w_mat(wg[:, in_dim:]), _w_mat(wc[:, in_dim:]),
            _col(p["b_gates"]), _col(p["b_can"]))


def _pack_input(x):
    """(B, N, 17, 64, 64) -> (C_PAD, N*B*M): time-major frames concatenated along lanes."""
    B, N, C = x.shape[0], x.shape[1], x.shape[2]
    xc = jnp.transpose(x.astype(_F32).reshape(B, N, C, M), (2, 1, 0, 3))
    xc = xc.reshape(C, N * B * M)
    return jnp.pad(xc, ((0, C_PAD - IN_CH), (0, 0)))


# ----------------------------------------------------------------------------------
# Model forward (AutoregressiveModel_cell)
# ----------------------------------------------------------------------------------
def forward(params, x, future_pred=9):
    """x: (B, N, 17, 64, 64) float32 -> (B, 1 + future_pred, 17, 64, 64)."""
    B, N, C, H, W = x.shape
    assert (H, W) == (HM, HM) and C == IN_CH and ENC_DIM == HID

    enc_p = _pack_encoder(params)
    dec_p = _pack_decoder(params)
    gru1_p = _pack_gru(params["gru1"], ENC_DIM)
    gru2_p = _pack_gru(params["gru2"], ENC_DIM)

    lanes = B * M
    x_cm = _pack_input(x)                                          # (C_PAD, N*B*M)

    # 1) Encoder over every observed frame (BN stats over all B*N frames), one matmul.
    enc = _run_encoder_seq(x_cm, enc_p)                            # (ENC_DIM, N*B*M)

    # 2) ConvGRU rollout over the observed frames (hidden state resident in VMEM).
    h1, h2 = _run_input_phase(enc, gru1_p, gru2_p, N, lanes)       # (HID, B*M) each

    # 3) Decoder + autoregressive future rollout in a single fused kernel.
    preds = _run_future_phase(h1, h2, enc_p, dec_p, gru1_p, gru2_p,
                              future_pred, lanes)                  # (T, 17, B*M)

    T = future_pred + 1
    return jnp.transpose(preds.reshape(T, IN_CH, B, HM, HM), (2, 0, 1, 3, 4))


# ----------------------------------------------------------------------------------
# Deterministic parameter initialization (synthetic, not a checkpoint)
# ----------------------------------------------------------------------------------
def init_params(key):
    ks = jax.random.split(key, 16)

    def conv_w(k, cout, cin):
        return jax.random.normal(k, (cout, cin, 3, 3), jnp.float32) * 0.1

    def vec(k, n, scale=0.05):
        return jax.random.normal(k, (n,), jnp.float32) * scale

    def gru(k0, k1, k2, k3, in_dim, hid):
        return {
            "w_gates": conv_w(k0, 2 * hid, in_dim + hid),
            "b_gates": vec(k1, 2 * hid),
            "w_can": conv_w(k2, hid, in_dim + hid),
            "b_can": vec(k3, hid),
        }

    return {
        "enc_w": conv_w(ks[0], ENC_DIM, IN_CH),
        "enc_b": vec(ks[1], ENC_DIM),
        "enc_gamma": 1.0 + vec(ks[2], ENC_DIM),
        "enc_beta": vec(ks[3], ENC_DIM),
        "dec_w": conv_w(ks[4], IN_CH, ENC_DIM),
        "dec_b": vec(ks[5], IN_CH),
        "dec_gamma": 1.0 + vec(ks[6], IN_CH),
        "dec_beta": vec(ks[7], IN_CH),
        "gru1": gru(ks[8], ks[9], ks[10], ks[11], ENC_DIM, HID),
        "gru2": gru(ks[12], ks[13], ks[14], ks[15], ENC_DIM, HID),
    }


# ----------------------------------------------------------------------------------
# Plain-JAX reference (mirrors the PyTorch module) for correctness checks
# ----------------------------------------------------------------------------------
def _ref_conv(x, w, b):
    y = lax.conv_general_dilated(x, w, (1, 1), "SAME",
                                 dimension_numbers=("NCHW", "OIHW", "NCHW"),
                                 precision=lax.Precision.HIGHEST)
    return y + b[None, :, None, None]


def _ref_conv_block(x, w, b, gamma, beta):
    y = _ref_conv(x, w, b)
    mean = jnp.mean(y, axis=(0, 2, 3), keepdims=True)
    var = jnp.mean(jnp.square(y - mean), axis=(0, 2, 3), keepdims=True)
    yn = (y - mean) * lax.rsqrt(var + BN_EPS)
    return jnp.maximum(yn * gamma[None, :, None, None] + beta[None, :, None, None], 0.0)


def _ref_gru(x, h, p):
    g = _ref_conv(jnp.concatenate([x, h], axis=1), p["w_gates"], p["b_gates"])
    reset = jax.nn.sigmoid(g[:, :HID])
    update = jax.nn.sigmoid(g[:, HID:])
    cand = jnp.tanh(_ref_conv(jnp.concatenate([x, reset * h], axis=1),
                              p["w_can"], p["b_can"]))
    return (1.0 - update) * h + update * cand


def _ref_forward(params, x, future_pred):
    B, N, C, H, W = x.shape
    enc = _ref_conv_block(x.reshape(B * N, C, H, W), params["enc_w"], params["enc_b"],
                          params["enc_gamma"], params["enc_beta"]).reshape(B, N, ENC_DIM, H, W)
    h1 = jnp.zeros((B, HID, H, W), _F32)
    h2 = jnp.zeros((B, HID, H, W), _F32)
    for t in range(N):
        h1 = _ref_gru(enc[:, t], h1, params["gru1"])
        h2 = _ref_gru(h1, h2, params["gru2"])
    de = _ref_conv_block(h2, params["dec_w"], params["dec_b"],
                         params["dec_gamma"], params["dec_beta"])
    preds = [de]
    for _ in range(future_pred):
        eo = _ref_conv_block(de, params["enc_w"], params["enc_b"],
                             params["enc_gamma"], params["enc_beta"])
        h1 = _ref_gru(eo, h1, params["gru1"])
        h2 = _ref_gru(h1, h2, params["gru2"])
        de = _ref_conv_block(h2, params["dec_w"], params["dec_b"],
                             params["dec_gamma"], params["dec_beta"])
        preds.append(de)
    return jnp.stack(preds, axis=1)


if __name__ == "__main__":
    _calibrate_roll_sign()

    key = jax.random.PRNGKey(0)
    pkey, xkey = jax.random.split(key)
    params = init_params(pkey)

    B, N, FUTURE = 2, 2, 2
    x = jax.random.normal(xkey, (B, N, IN_CH, HM, HM), jnp.float32)

    fwd = jax.jit(functools.partial(forward, params, future_pred=FUTURE))
    out = jax.block_until_ready(fwd(x))
    assert out.shape == (B, 1 + FUTURE, IN_CH, HM, HM), out.shape
    assert bool(jnp.all(jnp.isfinite(out)))

    # Tighter unit check: the fused encoder ConvBlock kernel vs the reference conv+BN+ReLU
    # (catches mis-wired taps/masks that the loose end-to-end tolerance could hide).
    enc_p = _pack_encoder(params)
    enc_k = jax.jit(lambda xc: _run_encoder_seq(xc, enc_p))(_pack_input(x))
    enc_k = jnp.transpose(enc_k.reshape(ENC_DIM, N, B, HM, HM), (2, 1, 0, 3, 4))
    enc_ref = _ref_conv_block(x.reshape(B * N, IN_CH, HM, HM), params["enc_w"],
                              params["enc_b"], params["enc_gamma"],
                              params["enc_beta"]).reshape(B, N, ENC_DIM, HM, HM)
    np.testing.assert_allclose(np.asarray(enc_k), np.asarray(enc_ref),
                               rtol=0.05, atol=0.03)

    # End-to-end structural check against the plain-JAX reference of the PyTorch module.
    # (Loose tolerance: in-kernel matmuls run in bf16 with f32 accumulation.)
    ref = jax.block_until_ready(
        jax.jit(functools.partial(_ref_forward, params, future_pred=FUTURE))(x))
    np.testing.assert_allclose(np.asarray(out), np.asarray(ref), rtol=0.1, atol=0.1)

    print("KERNEL_OK")
</pallas_src>

<mosaic_0001>
module attributes {stable_mosaic.version = 11 : i64} {
  func.func @k(%arg0: memref<8x128xf32, #tpu.memory_space<vmem>>, %arg1: memref<8x128xf32, #tpu.memory_space<vmem>>) attributes {dimension_semantics = [], scalar_prefetch = 0 : i64, scratch_operands = 0 : i64, tpu.core_type = #tpu.core_type<tc>} {
    %c0 = arith.constant 0 : index
    %c0_0 = arith.constant 0 : index
    %0 = vector.load %arg0[%c0, %c0_0] : memref<8x128xf32, #tpu.memory_space<vmem>>, vector<8x128xf32>
    %c1_i32 = arith.constant 1 : i32
    %1 = tpu.dynamic_rotate %0 by %c1_i32 dim 1 : vector<8x128xf32>, i32 -> vector<8x128xf32>
    %c0_1 = arith.constant 0 : index
    %c0_2 = arith.constant 0 : index
    %2 = vector.load %arg1[%c0_1, %c0_2] : memref<8x128xf32, #tpu.memory_space<vmem>>, vector<8x128xf32>
    tpu.vector_store %arg1[%c0_1, %c0_2], %1 {strides = array<i32>} : memref<8x128xf32, #tpu.memory_space<vmem>>, vector<8x128xf32>,
    return
  }
}

</mosaic_0001>

<bundles_post_ra>
// kernel: tpu_custom_call.1
= control target key start
LH: loop header
LB: loop body
LE: loop exit
PB: predicated region body
PF: predicated region fallthrough
CT: control target
= control target key end

     0   :  { %6 = vsyncpa [#allocation3], 0  ;;  %s128_s0 = inlined_call_operand.hbm [shape: f32[8,128], index: 0, kind: input, shape index: {}]   ;;  %s129_s1 = inlined_call_operand.hbm [shape: f32[8,128], index: 1, kind: output, shape index: {}]  }
   0x1   :  { %7 = vsyncpa [#allocation4], 0  ;;  %s91_s6 = smov [#allocation2]   ;;  %s43_s10 = scalar_lea.hbm %s128_s0, 128 }
   0x2   :  { %s14_s7 = sshll.u32 %s91_s6, 4  ;;  %p44_p0 = scmp.ne.s32.totalorder %s128_s0, %s43_s10  ;;  %s15_s7 = int_to_ptr.vmem [resolvable:$true] %s14_s7 }
   0x3   :  { %p47_p1 = scmp.lt.u32.totalorder %s43_s10, %s128_s0 }
   0x5   :  { %p49_p2 = pnand %p47_p1, %p44_p0 }
   0x7   :  { %52 = shalt.err (!%p49_p2)
}
   0x8   :  { %s53_s15 = scalar_lea.vmem %s15_s7, 128  ;;  %p58_p4 = scmp.lt.s32.totalorder %s15_s7, %s15_s7 }
   0x9   :  { %p54_p3 = scmp.ne.s32.totalorder %s15_s7, %s53_s15  ;;  %p59_p5 = scmp.lt.s32.totalorder %s53_s15, %s53_s15 }
   0xb   :  { %p60_p6 = por %p59_p5, %p58_p4 }
   0xd   :  { %p61_p7 = pnand %p60_p6, %p54_p3 }
   0xf   :  { %64 = shalt.err (!%p61_p7)
}
  0x10   :  { %17 = dma.hbm_to_vmem [thread:$0]  %s128_s0, 128, %s15_s7, [#allocation3]  }
  0x11   :  { %87 = dma.done.wait [#allocation3], 128  }
  0x12   :  { %88 = vsyncadd [#allocation3], 4294967168  ;;  %v21_v0 = vld [vmem:[#allocation2] sm:$0xff]  ;;  %s92_s18 = smov 1   ;;  %s93_s19 = smov [#allocation5]  }
  0x13   :  { %22 = vrot.lane.b32.xlu0 %v21_v0, %s92_s18  ;;  %s31_s20 = sshll.u32 %s93_s19, 4  ;;  %s32_s20 = int_to_ptr.vmem [resolvable:$true] %s31_s20 }
  0x14   :  { %s65_s21 = scalar_lea.vmem %s32_s20, 128  ;;  %p70_p9 = scmp.lt.s32.totalorder %s32_s20, %s32_s20 }
  0x15   :  { %p66_p8 = scmp.ne.s32.totalorder %s32_s20, %s65_s21  ;;  %p71_p10 = scmp.lt.s32.totalorder %s65_s21, %s65_s21 }
  0x17   :  { %p72_p11 = por %p71_p10, %p70_p9 }
  0x19   :  { %p73_p12 = pnand %p72_p11, %p66_p8 }
  0x85   :  { %v23_v1 = vpop.permute.xlu0 %22 }
  0x86   :  { %24 = vst [vmem:[#allocation5] sm:$0xff] %v23_v1 }
  0x87   :  { %76 = shalt.err (!%p73_p12)
}
  0x88   :  { %s77_s0 = scalar_lea.hbm %s129_s1, 128 }
  0x89   :  { %p78_p13 = scmp.ne.s32.totalorder %s129_s1, %s77_s0  ;;  %p81_p0 = scmp.lt.u32.totalorder %s77_s0, %s129_s1 }
  0x8b   :  { %p83_p1 = pnand %p81_p0, %p78_p13 }
  0x8d   :  { %86 = shalt.err (!%p83_p1)
}
  0x8e   :  { %34 = dma.vmem_to_hbm [thread:$0]  %s32_s20, 128, %s129_s1, [#allocation4]  }
  0x8f   :  { %89 = dma.done.wait [#allocation4], 128  }
  0x90   :  { %90 = vsyncadd [#allocation4], 4294967168 }
  0x91   :  { %38 = vsyncpa [#allocation3], 1 }
  0x92   :  { %39 = vsyncpa [#allocation4], 1 }

</bundles_post_ra>
